<compile_context>
chip_gen: v7x
topology: tpu7x:2x2x1
jax: 0.10.0
libtpu: 0.0.40
codegen_flags: <defaults>
</compile_context>

<pallas_src>
import functools

import jax
import jax.numpy as jnp
from jax import lax
from jax.experimental import pallas as pl
from jax.experimental.pallas import tpu as pltpu
import numpy as np


def _round_up(a, b):
    return -(-a // b) * b


def _make_kernel(K, S, P, TL, TH_p, CAR, L1, Cout_p):
    """Fused BasicBlock kernel for one (batch n, length-tile t) grid point.

    refs:
      xm_ref : (1, S, TL,  Cin_p)      bf16  non-overlapping main input block (phase-split)
      xh_ref : (1, S, CAR, Cin_p)      bf16  per-tile look-behind halo sliver
      w1_ref : (K, Cin_p, Cout_p)      bf16  conv1 taps (BN1 scale folded; centre slot unused)
      wc_ref : (Cin_p, 2*Cout_p)       bf16  [conv1 centre tap | 1x1 downsample] fused
      w2_ref : (K, Cout_p, Cout_p)     bf16  conv2 taps (BN2 scale folded)
      b_ref  : (3, Cout_p)             f32   rows: BN1 / BN2 / BNd shifts
      o_ref  : (1, TL, Cout_p)         bf16
    """

    def kernel(xm_ref, xh_ref, w1_ref, wc_ref, w2_ref, b_ref, o_ref):
        t = pl.program_id(1)

        # haloed per-phase window for this tile: stored rows [t*TL, t*TL + CAR + TL)
        win = jnp.concatenate([xh_ref[0], xm_ref[0]], axis=1)   # (S, CAR+TL, Cin_p) bf16

        b = b_ref[...]                                           # (3, Cout_p) f32
        b1, b2, bd = b[0:1, :], b[1:2, :], b[2:3, :]

        # ---- conv1 as K accumulating MXU dots; the centre tap also carries the 1x1
        #      downsample weights as Cout_p extra output columns (wide dot). -------------------
        acc = jnp.zeros((TH_p, Cout_p), jnp.float32)
        ident = None
        for k in range(K):
            p, q = k % S, k // S
            xs = win[p, q:q + TH_p, :]                           # (TH_p, Cin_p), contiguous
            if k == P:                                           # centre tap + fused downsample
                hd = jnp.dot(xs, wc_ref[...], preferred_element_type=jnp.float32)
                acc = acc + hd[:, :Cout_p]
                ident = hd[P:P + TL, Cout_p:] + bd               # (TL, Cout_p) f32
            else:
                acc = acc + jnp.dot(xs, w1_ref[k], preferred_element_type=jnp.float32)

        h = jnp.maximum(acc + b1, 0.0)                           # BN1 shift + ReLU (f32 VPU)
        # rows of h outside the valid range [0, L1) are conv2's zero padding / tail padding
        g = t * TL - P + lax.broadcasted_iota(jnp.int32, (TH_p, 1), 0)
        h = jnp.where((g >= 0) & (g < L1), h, 0.0).astype(jnp.bfloat16)

        # ---- conv2 (stride 1) as K accumulating dots + BN2 shift + residual + ReLU ------------
        y = jnp.zeros((TL, Cout_p), jnp.float32)
        for k in range(K):
            y = y + jnp.dot(h[k:k + TL, :], w2_ref[k], preferred_element_type=jnp.float32)
        y = y + b2 + ident
        o_ref[0] = jnp.maximum(y, 0.0).astype(o_ref.dtype)

    return kernel


def _fold_bn(gamma, beta, mean, var, eps=1e-5):
    scale = gamma / jnp.sqrt(var + eps)
    return scale, beta - mean * scale


def _pack_conv(w_oik, scale, cin_p, cout_p):
    """PyTorch (Cout, Cin, K) conv weight -> (K, Cin_p, Cout_p) bf16 with BN scale folded."""
    cout, cin, _ = w_oik.shape
    w = w_oik * scale[:, None, None]
    w = jnp.pad(w, ((0, cout_p - cout), (0, cin_p - cin), (0, 0)))
    return jnp.transpose(w, (2, 1, 0)).astype(jnp.bfloat16)


def _pack_shift(shift, cout_p):
    return jnp.pad(shift, (0, cout_p - shift.shape[0]))


def basic_block_forward(x_ncl, params, stride, tl=None):
    """Pallas TPU BasicBlock.forward; x_ncl is PyTorch-layout (N, C, L) -> (N, Cout, L1)."""
    N, Cin, L = x_ncl.shape
    Cout, _, K = params["w1"].shape
    S = int(stride)
    assert K % 2 == 1, "BasicBlock residual add requires an odd kernel_size"
    P = K // 2
    L1 = (L + 2 * P - K) // S + 1

    # NOTE: channels are lane-padded to 128; this targets ResNet-scale channel counts (>=64).
    # For very small channel counts most MXU columns / HBM bytes are padding zeros.
    Cin_p, Cout_p = _round_up(Cin, 128), _round_up(Cout, 128)

    # Length tile (output rows per grid step), multiple of 16.  Default 256; tune per
    # generation: larger on v5e/v6e (128 MiB VMEM), smaller on v7x (64 MiB, keep >=2 tiles/core).
    if tl is None:
        tl = 256
    TL = _round_up(min(tl, _round_up(L1, 16)), 16)
    T = -(-L1 // TL)
    TH_p = _round_up(TL + 2 * P, 16)                 # conv1 M-dim, bf16 sublane-pack aligned
    Qmax = (K - 1) // S
    CAR = _round_up(max(TH_p - TL + Qmax, 1), 16)    # per-tile look-behind halo rows (aligned)
    R = T * TL + CAR                                 # stored per-phase rows

    # -- single wrapper pass (fused by XLA): NCL->NLC, zero-pad, bf16 cast, stride-phase split --
    # stored[n, p, r, c] = x_padded[n, (r - P)*S + p, c]   (zeros outside the real signal)
    x_nlc = jnp.transpose(x_ncl, (0, 2, 1)).astype(jnp.float32)
    left = P * S + P
    right = R * S - left - L
    assert right >= 0
    xe = jnp.pad(x_nlc, ((0, 0), (left, right), (0, Cin_p - Cin))).astype(jnp.bfloat16)
    stored = jnp.transpose(xe.reshape(N, R, S, Cin_p), (0, 2, 1, 3))        # (N, S, R, Cin_p)
    xm = stored[:, :, CAR:, :]                                              # (N, S, T*TL, Cin_p)
    xh = jnp.concatenate(                                                   # (N, S, T*CAR, Cin_p)
        [stored[:, :, t * TL:t * TL + CAR, :] for t in range(T)], axis=2)

    # -- fold BatchNorm (eval mode) into the weights; keep only per-channel shifts --------------
    s1, b1 = _fold_bn(*params["bn1"])
    s2, b2 = _fold_bn(*params["bn2"])
    sd, bd = _fold_bn(*params["bnd"])
    w1k = _pack_conv(params["w1"], s1, Cin_p, Cout_p)        # (K, Cin_p, Cout_p)
    w2k = _pack_conv(params["w2"], s2, Cout_p, Cout_p)       # (K, Cout_p, Cout_p)
    wdk = _pack_conv(params["wd"], sd, Cin_p, Cout_p)        # (1, Cin_p, Cout_p)
    wc = jnp.concatenate([w1k[P], wdk[0]], axis=-1)          # centre tap | downsample fused
    bias = jnp.stack([_pack_shift(b1, Cout_p), _pack_shift(b2, Cout_p),
                      _pack_shift(bd, Cout_p)]).astype(jnp.float32)          # (3, Cout_p)

    kernel = _make_kernel(K, S, P, TL, TH_p, CAR, L1, Cout_p)

    # advisory cost estimate + VMEM budget (double-buffered I/O blocks + weights + live values)
    flops = 2 * N * T * (TH_p * Cin_p * (K + 1) * Cout_p + TL * K * Cout_p * Cout_p)
    bytes_accessed = 2 * (xm.size + xh.size + w1k.size + wc.size + w2k.size
                          + N * T * TL * Cout_p) + 4 * bias.size
    blk = 2 * 2 * (S * TL * Cin_p + S * CAR * Cin_p + TL * Cout_p)
    wgt = 2 * (2 * (w1k.size + wc.size + w2k.size) + 4 * bias.size)
    live = 4 * (2 * S * (TL + CAR) * Cin_p + 4 * 2 * TH_p * Cout_p + 4 * TL * Cout_p)
    vmem_limit = int(min(56 * 2**20, max(32 * 2**20, 2 * (blk + wgt + live))))

    out = pl.pallas_call(
        kernel,
        grid=(N, T),
        in_specs=[
            pl.BlockSpec((1, S, TL, Cin_p), lambda n, t: (n, 0, t, 0)),
            pl.BlockSpec((1, S, CAR, Cin_p), lambda n, t: (n, 0, t, 0)),
            pl.BlockSpec((K, Cin_p, Cout_p), lambda n, t: (0, 0, 0)),
            pl.BlockSpec((Cin_p, 2 * Cout_p), lambda n, t: (0, 0)),
            pl.BlockSpec((K, Cout_p, Cout_p), lambda n, t: (0, 0, 0)),
            pl.BlockSpec((3, Cout_p), lambda n, t: (0, 0)),
        ],
        out_specs=pl.BlockSpec((1, TL, Cout_p), lambda n, t: (n, t, 0)),
        out_shape=jax.ShapeDtypeStruct((N, T * TL, Cout_p), jnp.bfloat16),
        compiler_params=pltpu.CompilerParams(
            dimension_semantics=("parallel", "parallel"),
            vmem_limit_bytes=vmem_limit),
        cost_estimate=pl.CostEstimate(flops=flops, transcendentals=0,
                                      bytes_accessed=bytes_accessed),
    )(xm, xh, w1k, wc, w2k, bias)

    # bf16 NLC kernel output -> drop channel/length padding -> PyTorch NCL f32.
    # (A consumer that keeps NLC / bf16 can skip this final pass entirely.)
    out = out[:, :L1, :Cout]
    return jnp.transpose(out, (0, 2, 1)).astype(jnp.float32)


# ---------------------- pure-JAX reference (for verification) ----------------------
def _ref_conv1d(x_ncl, w_oik, stride, pad):
    return lax.conv_general_dilated(
        x_ncl, w_oik, window_strides=(stride,), padding=[(pad, pad)],
        dimension_numbers=("NCH", "OIH", "NCH"))


def _ref_block(x_ncl, params, stride):
    def bn(y, p):
        s, b = _fold_bn(*p)
        return y * s[None, :, None] + b[None, :, None]

    k = params["w1"].shape[-1]
    out = _ref_conv1d(x_ncl, params["w1"], stride, k // 2)
    out = jnp.maximum(bn(out, params["bn1"]), 0.0)
    out = _ref_conv1d(out, params["w2"], 1, k // 2)
    out = bn(out, params["bn2"])
    ident = bn(_ref_conv1d(x_ncl, params["wd"], stride, 0), params["bnd"])
    return jnp.maximum(out + ident, 0.0)


# --------------------------------------- main ---------------------------------------
if __name__ == "__main__":
    def bn_params(c):
        ar = jnp.arange(c, dtype=jnp.float32)
        return (1.0 + 0.05 * ar, 0.02 * ar, 0.01 * ar, 1.0 + 0.10 * ar)

    key = jax.random.PRNGKey(0)

    # (N, C_in, C_out, L, K, stride, tl)
    configs = [
        (2, 4, 8, 40, 3, 2, 8),      # stride-2 convs, multi-tile path (ragged last tile)
        (2, 4, 8, 16, 3, 1, None),   # stride-1 convs, single tile, default tile size
    ]

    for (N, C_in, C_out, L, K, stride, tl) in configs:
        key, kx, k1, k2, kd = jax.random.split(key, 5)
        x = jax.random.normal(kx, (N, C_in, L), jnp.float32)
        params = {
            "w1": 0.1 * jax.random.normal(k1, (C_out, C_in, K), jnp.float32),
            "w2": 0.1 * jax.random.normal(k2, (C_out, C_out, K), jnp.float32),
            "wd": 0.1 * jax.random.normal(kd, (C_out, C_in, 1), jnp.float32),
            "bn1": bn_params(C_out),
            "bn2": bn_params(C_out),
            "bnd": bn_params(C_out),
        }

        run = jax.jit(functools.partial(basic_block_forward, stride=stride, tl=tl))
        out = jax.block_until_ready(run(x, params))

        ref = _ref_block(x, params, stride)
        # bf16 MXU operands / bf16 output (f32 accumulation) -> relaxed tolerance vs f32 ref
        np.testing.assert_allclose(np.asarray(out), np.asarray(ref), rtol=3e-2, atol=3e-2)

    print("KERNEL_OK")
</pallas_src>

<mosaic_0001>
module attributes {stable_mosaic.version = 11 : i64} {
  func.func @kernel(%arg0: i32, %arg1: i32, %arg2: memref<1x2x16x128xbf16, #tpu.memory_space<vmem>>, %arg3: memref<1x2x32x128xbf16, #tpu.memory_space<vmem>>, %arg4: memref<3x128x128xbf16, #tpu.memory_space<vmem>>, %arg5: memref<128x256xbf16, #tpu.memory_space<vmem>>, %arg6: memref<3x128x128xbf16, #tpu.memory_space<vmem>>, %arg7: memref<3x128xf32, #tpu.memory_space<vmem>>, %arg8: memref<1x16x128xbf16, #tpu.memory_space<vmem>>) attributes {dimension_semantics = [#tpu.dimension_semantics<parallel>, #tpu.dimension_semantics<parallel>], iteration_bounds = array<i64: 2, 2>, scalar_prefetch = 0 : i64, scratch_operands = 0 : i64, tpu.core_type = #tpu.core_type<tc>, window_params = [{transform_indices = @transform_0, window_bounds = array<i64: 1, 2, 16, 128>}, {transform_indices = @transform_1, window_bounds = array<i64: 1, 2, 32, 128>}, {pipeline_mode = #tpu.pipeline_mode<synchronous>, transform_indices = @transform_2, window_bounds = array<i64: 3, 128, 128>}, {pipeline_mode = #tpu.pipeline_mode<synchronous>, transform_indices = @transform_3, window_bounds = array<i64: 128, 256>}, {pipeline_mode = #tpu.pipeline_mode<synchronous>, transform_indices = @transform_4, window_bounds = array<i64: 3, 128, 128>}, {pipeline_mode = #tpu.pipeline_mode<synchronous>, transform_indices = @transform_5, window_bounds = array<i64: 3, 128>}, {transform_indices = @transform_6, window_bounds = array<i64: 1, 16, 128>}]} {
    %c0 = arith.constant 0 : index
    %c0_0 = arith.constant 0 : index
    %c0_1 = arith.constant 0 : index
    %c0_2 = arith.constant 0 : index
    %0 = vector.load %arg3[%c0, %c0_0, %c0_1, %c0_2] : memref<1x2x32x128xbf16, #tpu.memory_space<vmem>>, vector<1x2x32x128xbf16>
    %1 = vector.shape_cast %0 : vector<1x2x32x128xbf16> to vector<2x32x128xbf16>
    %c0_3 = arith.constant 0 : index
    %c0_4 = arith.constant 0 : index
    %c0_5 = arith.constant 0 : index
    %c0_6 = arith.constant 0 : index
    %2 = vector.load %arg2[%c0_3, %c0_4, %c0_5, %c0_6] : memref<1x2x16x128xbf16, #tpu.memory_space<vmem>>, vector<1x2x16x128xbf16>
    %3 = vector.shape_cast %2 : vector<1x2x16x128xbf16> to vector<2x16x128xbf16>
    %4 = tpu.concatenate %1, %3 in 1 : vector<2x32x128xbf16>, vector<2x16x128xbf16> -> vector<2x48x128xbf16>
    %c0_7 = arith.constant 0 : index
    %c0_8 = arith.constant 0 : index
    %5 = vector.load %arg7[%c0_7, %c0_8] : memref<3x128xf32, #tpu.memory_space<vmem>>, vector<3x128xf32>
    %6 = vector.extract_strided_slice %5 {offsets = [0, 0], sizes = [1, 128], strides = [1, 1]} : vector<3x128xf32> to vector<1x128xf32>
    %7 = vector.extract_strided_slice %5 {offsets = [1, 0], sizes = [1, 128], strides = [1, 1]} : vector<3x128xf32> to vector<1x128xf32>
    %8 = vector.extract_strided_slice %5 {offsets = [2, 0], sizes = [1, 128], strides = [1, 1]} : vector<3x128xf32> to vector<1x128xf32>
    %cst = arith.constant 0.000000e+00 : f32
    %9 = vector.broadcast %cst : f32 to vector<32x128xf32>
    %10 = vector.extract_strided_slice %4 {offsets = [0, 0, 0], sizes = [1, 32, 128], strides = [1, 1, 1]} : vector<2x48x128xbf16> to vector<1x32x128xbf16>
    %11 = vector.shape_cast %10 : vector<1x32x128xbf16> to vector<32x128xbf16>
    %c0_9 = arith.constant 0 : index
    %c0_10 = arith.constant 0 : index
    %c0_11 = arith.constant 0 : index
    %12 = vector.load %arg4[%c0_9, %c0_10, %c0_11] : memref<3x128x128xbf16, #tpu.memory_space<vmem>>, vector<1x128x128xbf16>
    %13 = vector.shape_cast %12 : vector<1x128x128xbf16> to vector<128x128xbf16>
    %cst_12 = arith.constant dense<0.000000e+00> : vector<32x128xf32>
    %14 = tpu.matmul %11, %13, %cst_12 {dimension_numbers = #tpu.dot_dimension_numbers<[1], [0], [0], [1], [0, 0, 1, 1], [], []>} : vector<32x128xbf16>, vector<128x128xbf16>, vector<32x128xf32> -> vector<32x128xf32>
    %15 = arith.addf %9, %14 : vector<32x128xf32>
    %16 = vector.extract_strided_slice %4 {offsets = [1, 0, 0], sizes = [1, 32, 128], strides = [1, 1, 1]} : vector<2x48x128xbf16> to vector<1x32x128xbf16>
    %17 = vector.shape_cast %16 : vector<1x32x128xbf16> to vector<32x128xbf16>
    %c0_13 = arith.constant 0 : index
    %c0_14 = arith.constant 0 : index
    %18 = vector.load %arg5[%c0_13, %c0_14] : memref<128x256xbf16, #tpu.memory_space<vmem>>, vector<128x256xbf16>
    %cst_15 = arith.constant dense<0.000000e+00> : vector<32x256xf32>
    %19 = tpu.matmul %17, %18, %cst_15 {dimension_numbers = #tpu.dot_dimension_numbers<[1], [0], [0], [1], [0, 0, 1, 1], [], []>} : vector<32x128xbf16>, vector<128x256xbf16>, vector<32x256xf32> -> vector<32x256xf32>
    %20 = vector.extract_strided_slice %19 {offsets = [0, 0], sizes = [32, 128], strides = [1, 1]} : vector<32x256xf32> to vector<32x128xf32>
    %21 = arith.addf %15, %20 : vector<32x128xf32>
    %22 = vector.extract_strided_slice %19 {offsets = [1, 128], sizes = [16, 128], strides = [1, 1]} : vector<32x256xf32> to vector<16x128xf32>
    %23 = vector.broadcast %8 : vector<1x128xf32> to vector<16x128xf32>
    %24 = arith.addf %22, %23 : vector<16x128xf32>
    %25 = vector.extract_strided_slice %4 {offsets = [0, 1, 0], sizes = [1, 32, 128], strides = [1, 1, 1]} : vector<2x48x128xbf16> to vector<1x32x128xbf16>
    %26 = vector.shape_cast %25 : vector<1x32x128xbf16> to vector<32x128xbf16>
    %c2 = arith.constant 2 : index
    %c0_16 = arith.constant 0 : index
    %c0_17 = arith.constant 0 : index
    %27 = vector.load %arg4[%c2, %c0_16, %c0_17] : memref<3x128x128xbf16, #tpu.memory_space<vmem>>, vector<1x128x128xbf16>
    %28 = vector.shape_cast %27 : vector<1x128x128xbf16> to vector<128x128xbf16>
    %cst_18 = arith.constant dense<0.000000e+00> : vector<32x128xf32>
    %29 = tpu.matmul %26, %28, %cst_18 {dimension_numbers = #tpu.dot_dimension_numbers<[1], [0], [0], [1], [0, 0, 1, 1], [], []>} : vector<32x128xbf16>, vector<128x128xbf16>, vector<32x128xf32> -> vector<32x128xf32>
    %30 = arith.addf %21, %29 : vector<32x128xf32>
    %31 = vector.broadcast %6 : vector<1x128xf32> to vector<32x128xf32>
    %32 = arith.addf %30, %31 : vector<32x128xf32>
    %cst_19 = arith.constant 0.000000e+00 : f32
    %33 = vector.broadcast %cst_19 : f32 to vector<32x128xf32>
    %34 = arith.maximumf %32, %33 : vector<32x128xf32>
    %c16_i32 = arith.constant 16 : i32
    %35 = arith.muli %arg1, %c16_i32 : i32
    %c1_i32 = arith.constant 1 : i32
    %36 = arith.subi %35, %c1_i32 : i32
    %37 = tpu.iota {dimensions = array<i32: 0>} : vector<32x1xi32>
    %38 = vector.broadcast %36 : i32 to vector<32x1xi32>
    %39 = arith.addi %38, %37 : vector<32x1xi32>
    %c0_i32 = arith.constant 0 : i32
    %40 = vector.broadcast %c0_i32 : i32 to vector<32x1xi32>
    %41 = arith.cmpi sge, %39, %40 : vector<32x1xi32>
    %c20_i32 = arith.constant 20 : i32
    %42 = vector.broadcast %c20_i32 : i32 to vector<32x1xi32>
    %43 = arith.cmpi slt, %39, %42 : vector<32x1xi32>
    %44 = arith.andi %41, %43 : vector<32x1xi1>
    %cst_20 = arith.constant 0.000000e+00 : f32
    %45 = vector.shape_cast %44 : vector<32x1xi1> to vector<32x1xi1>
    %46 = vector.broadcast %45 : vector<32x1xi1> to vector<32x128xi1>
    %47 = vector.broadcast %cst_20 : f32 to vector<32x128xf32>
    %48 = arith.select %46, %34, %47 : vector<32x128xi1>, vector<32x128xf32>
    %49 = arith.truncf %48 : vector<32x128xf32> to vector<32x128xbf16>
    %cst_21 = arith.constant 0.000000e+00 : f32
    %50 = vector.broadcast %cst_21 : f32 to vector<16x128xf32>
    %51 = vector.extract_strided_slice %49 {offsets = [0, 0], sizes = [16, 128], strides = [1, 1]} : vector<32x128xbf16> to vector<16x128xbf16>
    %c0_22 = arith.constant 0 : index
    %c0_23 = arith.constant 0 : index
    %c0_24 = arith.constant 0 : index
    %52 = vector.load %arg6[%c0_22, %c0_23, %c0_24] : memref<3x128x128xbf16, #tpu.memory_space<vmem>>, vector<1x128x128xbf16>
    %53 = vector.shape_cast %52 : vector<1x128x128xbf16> to vector<128x128xbf16>
    %cst_25 = arith.constant dense<0.000000e+00> : vector<16x128xf32>
    %54 = tpu.matmul %51, %53, %cst_25 {dimension_numbers = #tpu.dot_dimension_numbers<[1], [0], [0], [1], [0, 0, 1, 1], [], []>} : vector<16x128xbf16>, vector<128x128xbf16>, vector<16x128xf32> -> vector<16x128xf32>
    %55 = arith.addf %50, %54 : vector<16x128xf32>
    %56 = vector.extract_strided_slice %49 {offsets = [1, 0], sizes = [16, 128], strides = [1, 1]} : vector<32x128xbf16> to vector<16x128xbf16>
    %c1 = arith.constant 1 : index
    %c0_26 = arith.constant 0 : index
    %c0_27 = arith.constant 0 : index
    %57 = vector.load %arg6[%c1, %c0_26, %c0_27] : memref<3x128x128xbf16, #tpu.memory_space<vmem>>, vector<1x128x128xbf16>
    %58 = vector.shape_cast %57 : vector<1x128x128xbf16> to vector<128x128xbf16>
    %cst_28 = arith.constant dense<0.000000e+00> : vector<16x128xf32>
    %59 = tpu.matmul %56, %58, %cst_28 {dimension_numbers = #tpu.dot_dimension_numbers<[1], [0], [0], [1], [0, 0, 1, 1], [], []>} : vector<16x128xbf16>, vector<128x128xbf16>, vector<16x128xf32> -> vector<16x128xf32>
    %60 = arith.addf %55, %59 : vector<16x128xf32>
    %61 = vector.extract_strided_slice %49 {offsets = [2, 0], sizes = [16, 128], strides = [1, 1]} : vector<32x128xbf16> to vector<16x128xbf16>
    %c2_29 = arith.constant 2 : index
    %c0_30 = arith.constant 0 : index
    %c0_31 = arith.constant 0 : index
    %62 = vector.load %arg6[%c2_29, %c0_30, %c0_31] : memref<3x128x128xbf16, #tpu.memory_space<vmem>>, vector<1x128x128xbf16>
    %63 = vector.shape_cast %62 : vector<1x128x128xbf16> to vector<128x128xbf16>
    %cst_32 = arith.constant dense<0.000000e+00> : vector<16x128xf32>
    %64 = tpu.matmul %61, %63, %cst_32 {dimension_numbers = #tpu.dot_dimension_numbers<[1], [0], [0], [1], [0, 0, 1, 1], [], []>} : vector<16x128xbf16>, vector<128x128xbf16>, vector<16x128xf32> -> vector<16x128xf32>
    %65 = arith.addf %60, %64 : vector<16x128xf32>
    %66 = vector.broadcast %7 : vector<1x128xf32> to vector<16x128xf32>
    %67 = arith.addf %65, %66 : vector<16x128xf32>
    %68 = arith.addf %67, %24 : vector<16x128xf32>
    %cst_33 = arith.constant 0.000000e+00 : f32
    %69 = vector.broadcast %cst_33 : f32 to vector<16x128xf32>
    %70 = arith.maximumf %68, %69 : vector<16x128xf32>
    %71 = arith.truncf %70 : vector<16x128xf32> to vector<16x128xbf16>
    %c0_34 = arith.constant 0 : index
    %c0_35 = arith.constant 0 : index
    %c0_36 = arith.constant 0 : index
    %72 = vector.load %arg8[%c0_34, %c0_35, %c0_36] : memref<1x16x128xbf16, #tpu.memory_space<vmem>>, vector<1x16x128xbf16>
    %73 = vector.shape_cast %72 : vector<1x16x128xbf16> to vector<16x128xbf16>
    %74 = vector.shape_cast %71 : vector<16x128xbf16> to vector<1x16x128xbf16>
    tpu.vector_store %arg8[%c0_34, %c0_35, %c0_36], %74 {strides = array<i32>} : memref<1x16x128xbf16, #tpu.memory_space<vmem>>, vector<1x16x128xbf16>,
    return
  }
  func.func @transform_0(%arg0: i32, %arg1: i32) -> (i32, i32, i32, i32) {
    %c0_i32 = arith.constant 0 : i32
    %c0_i32_0 = arith.constant 0 : i32
    %c0_i32_1 = arith.constant 0 : i32
    return %arg0, %c0_i32, %arg1, %c0_i32_0 : i32, i32, i32, i32
  }
  func.func @transform_1(%arg0: i32, %arg1: i32) -> (i32, i32, i32, i32) {
    %c0_i32 = arith.constant 0 : i32
    %c0_i32_0 = arith.constant 0 : i32
    %c0_i32_1 = arith.constant 0 : i32
    return %arg0, %c0_i32, %arg1, %c0_i32_0 : i32, i32, i32, i32
  }
  func.func @transform_2(%arg0: i32, %arg1: i32) -> (i32, i32, i32) {
    %c0_i32 = arith.constant 0 : i32
    %c0_i32_0 = arith.constant 0 : i32
    %c0_i32_1 = arith.constant 0 : i32
    %c0_i32_2 = arith.constant 0 : i32
    return %c0_i32, %c0_i32_0, %c0_i32_1 : i32, i32, i32
  }
  func.func @transform_3(%arg0: i32, %arg1: i32) -> (i32, i32) {
    %c0_i32 = arith.constant 0 : i32
    %c0_i32_0 = arith.constant 0 : i32
    %c0_i32_1 = arith.constant 0 : i32
    return %c0_i32, %c0_i32_0 : i32, i32
  }
  func.func @transform_4(%arg0: i32, %arg1: i32) -> (i32, i32, i32) {
    %c0_i32 = arith.constant 0 : i32
    %c0_i32_0 = arith.constant 0 : i32
    %c0_i32_1 = arith.constant 0 : i32
    %c0_i32_2 = arith.constant 0 : i32
    return %c0_i32, %c0_i32_0, %c0_i32_1 : i32, i32, i32
  }
  func.func @transform_5(%arg0: i32, %arg1: i32) -> (i32, i32) {
    %c0_i32 = arith.constant 0 : i32
    %c0_i32_0 = arith.constant 0 : i32
    %c0_i32_1 = arith.constant 0 : i32
    return %c0_i32, %c0_i32_0 : i32, i32
  }
  func.func @transform_6(%arg0: i32, %arg1: i32) -> (i32, i32, i32) {
    %c0_i32 = arith.constant 0 : i32
    %c0_i32_0 = arith.constant 0 : i32
    return %arg0, %arg1, %c0_i32 : i32, i32, i32
  }
}

</mosaic_0001>

<bundles_post_ra>
// kernel: basic_block_forward.1
= control target key start
LH: loop header
LB: loop body
LE: loop exit
PB: predicated region body
PF: predicated region fallthrough
CT: control target
= control target key end

     0   :  { %s1925_s21 = smov 0   ;;  %s1927_s22 = smov 0   ;;  %s2272_s0 = inlined_call_operand.vmem [shape: bf16[2,2,32,128], index: 0, kind: input, shape index: {}]   ;;  %s2273_s1 = inlined_call_operand.vmem [shape: bf16[2,2,64,128], index: 1, kind: input, shape index: {}]   ;;  %s2274_s2 = inlined_call_operand.vmem [shape: bf16[3,128,128], index: 2, kind: input, shape index: {}]   ;;  %s2275_s3 = inlined_call_operand.vmem [shape: bf16[128,256], index: 3, kind: input, shape index: {}]   ;;  %s2276_s4 = inlined_call_operand.vmem [shape: bf16[3,128,128], index: 4, kind: input, shape index: {}]   ;;  %s2277_s5 = inlined_call_operand.vmem [shape: f32[3,128], index: 5, kind: input, shape index: {}]   ;;  %s2278_s6 = inlined_call_operand.vmem [shape: bf16[2,32,128], index: 6, kind: output, shape index: {}]  }
   0x1   :  { %s1929_s23 = smov 0   ;;  %s1931_s24 = smov 0  }
   0x2   :  { %s1933_s25 = smov 0   ;;  %s1935_s26 = smov 0  }
   0x3   :  { %s1937_s27 = smov 0  }
   0x4 LB: > { %s25_s28 = sadd.s32 1, %s1877_s25  ;;  %s28_s29 = sadd.s32 1, %s1881_s26  ;;  %s1885_s27 = sphi %s1937_s27, %s16_s27   ;;  %s1881_s26 = sphi %s1935_s26, %s2285_s26   ;;  %s1877_s25 = sphi %s1933_s25, %s2284_s25   ;;  %s1873_s24 = sphi %s1931_s24, %s2283_s24   ;;  %s1869_s23 = sphi %s1929_s23, %s2282_s23   ;;  %s1865_s22 = sphi %s1927_s22, %s2281_s22   ;;  %s1861_s21 = sphi %s1925_s21, %s2280_s21  }
   0x5   : > { %p26_p0 = scmp.ge.s32.totalorder %s25_s28, 2  ;;  %p44_p1 = scmp.ne.s32.totalorder %s1865_s22, %s1861_s21 }
   0x6   : > { %p45_p2 = scmp.eq.s32.totalorder %s1885_s27, 0  ;;  %s37_s10 = sadd.s32 1, %s1865_s22 }
   0x7   : > { %s2287_s28 = smov (%p26_p0, %s25_s28), 0  ;;  %s2289_s29 = smov (!%p26_p0, %s28_s29), %s1881_s26 }
   0x8   : > { %p1968_p3 = por %p45_p2, %p44_p1  ;;  %p30_p4 = scmp.ge.s32.totalorder %s2289_s29, 2 }
   0x9   : > { %s33_s7 = ssub.s32 %s1877_s25, %s2287_s28  ;;  %p1416_p6 = scmp.ge.s32.totalorder %s1885_s27, 4 }
   0xa   : > { %s2291_s29 = smov (%p30_p4, %s2289_s29), 0 }
   0xb   : > { %s32_s8 = ssub.s32 %s1881_s26, %s2291_s29  ;;  %222 = sbr.rel (%p1416_p6) target bundleno = 35 (0x23), region = 32 }
   0xc   : > { %s34_s9 = sor.u32 %s33_s7, %s32_s8 }
   0xd   : > { %p35_p5 = scmp.eq.s32.totalorder %s34_s9, 0 }
   0xf   : > { %s1980_s11 = scalar_select %p35_p5, %s1865_s22, %s37_s10  }
  0x12   : > { %225 = sbr.rel (!%p1968_p3) target bundleno = 26 (0x1a), region = 36  ;;  %s227_s12 = sand.u32 (%p1968_p3), 1, %s1865_s22  }
  0x13   : > { %s1418_s13 = sshll.u32 (%p1968_p3), %s1877_s25, 1  ;;  %s1417_s14 = sshll.u32 (%p1968_p3), %s227_s12, 4 }
  0x14   : > { %s1419_s15 = sshll.u32 (%p1968_p3), %s1881_s26, 3  ;;  %s229_s7 = scalar_lea.vmem (%p1968_p3), [#allocation2], %s1417_s14 }
  0x15   : > { %s232_s16 = sadd.s32 (%p1968_p3), %s1419_s15, %s1418_s13 }
  0x16   : > { %s1420_s17 = sshll.u32 (%p1968_p3), %s232_s16, 2 }
  0x17   : > { %s234_s20 = scalar_lea.vmem (%p1968_p3), %s2272_s0, %s1420_s17 }
  0x18   : > { %v250_v0 = vld [vmem:[%s234_s20] sm:$0xff] (%p1968_p3)   ;;  %v254_v1 = vld [vmem:[%s234_s20 + $0x10] sm:$0xff] (%p1968_p3)  }
  0x19   : > { %251 = vst [vmem:[%s229_s7] sm:$0xff] %v250_v0   ;;  %255 = vst [vmem:[%s229_s7 + $0x8] sm:$0xff] %v254_v1  }
  0x1a PF: > { %288 = sbr.rel (!%p1968_p3) target bundleno = 35 (0x23), region = 77  ;;  %s290_s8 = sand.u32 (%p1968_p3), 1, %s1865_s22  }
  0x1b   : > { %s1422_s9 = sshll.u32 (%p1968_p3), %s1877_s25, 2  ;;  %s1421_s10 = sshll.u32 (%p1968_p3), %s290_s8, 5 }
  0x1c   : > { %s1423_s12 = sshll.u32 (%p1968_p3), %s1881_s26, 4  ;;  %s292_s14 = scalar_lea.vmem (%p1968_p3), [#allocation3], %s1421_s10 }
  0x1d   : > { %s295_s13 = sadd.s32 (%p1968_p3), %s1423_s12, %s1422_s9 }
  0x1e   : > { %s1424_s15 = sshll.u32 (%p1968_p3), %s295_s13, 2 }
  0x1f   : > { %s297_s18 = scalar_lea.vmem (%p1968_p3), %s2273_s1, %s1424_s15 }
  0x20   : > { %v313_v2 = vld [vmem:[%s297_s18] sm:$0xff] (%p1968_p3)   ;;  %v317_v3 = vld [vmem:[%s297_s18 + $0x8] sm:$0xff] (%p1968_p3)  }
  0x21   : > { %v321_v4 = vld [vmem:[%s297_s18 + $0x20] sm:$0xff]   ;;  %314 = vst [vmem:[%s292_s14] sm:$0xff] %v313_v2   ;;  %318 = vst [vmem:[%s292_s14 + $0x8] sm:$0xff] %v317_v3   ;;  %v325_v5 = vld [vmem:[%s297_s18 + $0x28] sm:$0xff]  }
  0x22   : > { %322 = vst [vmem:[%s292_s14 + $0x10] sm:$0xff] %v321_v4   ;;  %326 = vst [vmem:[%s292_s14 + $0x18] sm:$0xff] %v325_v5  }
  0x23 PF: > { %p1425_p7 = scmp.ge.s32.totalorder %s1885_s27, 1  ;;  %p366_p8 = scmp.lt.s32.totalorder %s1885_s27, 5 }
  0x25   : > { %p367_p9 = pnand %p1425_p7, %p366_p8 }
  0x26   : > { %v1762_v6 = vld [vmem:[%s2275_s3 + $0x4] ss:$8 sps:$4 sm:$0xff] (!%p367_p9)   ;;  %v1887_v8 = vmov (!%p367_p9), 0   ;;  %v1765_v9 = vld [vmem:[%s2275_s3] ss:$8 sps:$4 sm:$0xff] (!%p367_p9)   ;;  %v1772_v14 = vld [vmem:[%s2274_s2 + $0x10] sm:$0xff] (!%p367_p9)  }
  0x27   : > { %370 = sbr.rel (%p367_p9) target bundleno = 591 (0x24f), region = 118  ;;  %v1764_v7 = vld [vmem:[%s2274_s2] sm:$0xff] (!%p367_p9)   ;;  %614 = vmatprep.mubr.bf16.mxu0 (!%p367_p9), %v1887_v8  ;;  %582 = vmatprep.subr.bf16.mxu0 (!%p367_p9), %v1762_v6  ;;  %v1766_v10 = vld [vmem:[%s2275_s3 + $0x14] ss:$8 sps:$4 sm:$0xff] (!%p367_p9)   ;;  %v1768_v11 = vld [vmem:[%s2274_s2 + $0x8] sm:$0xff] (!%p367_p9)   ;;  %s373_s13 = sand.u32 (!%p367_p9), 1, %s1861_s21  }
  0x28   : > { %1603 = vmatprep.subr.bf16.mxu1 (!%p367_p9), %v1764_v7  ;;  %583 = vmatpush1.bf16.msra.mxu0 (!%p367_p9), %v1765_v9  ;;  %v1769_v12 = vld [vmem:[%s2275_s3 + $0x10] ss:$8 sps:$4 sm:$0xff] (!%p367_p9)   ;;  %v1770_v13 = vld [vmem:[%s2275_s3 + $0x24] ss:$8 sps:$4 sm:$0xff] (!%p367_p9)   ;;  %v1773_v15 = vld [vmem:[%s2275_s3 + $0x20] ss:$8 sps:$4 sm:$0xff] (!%p367_p9)   ;;  %v731_v9 = vlaneseq (!%p367_p9) }
  0x29   : > { %1604 = vmatpush3.bf16.msra.mxu1 (!%p367_p9), %v1764_v7  ;;  %584 = vmatprep.subr.bf16.mxu0 (!%p367_p9), %v1766_v10  ;;  %v1774_v16 = vld [vmem:[%s2275_s3 + $0x34] ss:$8 sps:$4 sm:$0xff] (!%p367_p9)   ;;  %v1777_v18 = vld [vmem:[%s2275_s3 + $0x30] ss:$8 sps:$4 sm:$0xff] (!%p367_p9)   ;;  %v1778_v19 = vld [vmem:[%s2275_s3 + $0x44] ss:$8 sps:$4 sm:$0xff] (!%p367_p9)  }
  0x2a   : > { %1605 = vmatprep.subr.bf16.mxu1 (!%p367_p9), %v1768_v11  ;;  %v1776_v17 = vld [vmem:[%s2274_s2 + $0x18] sm:$0xff] (!%p367_p9)   ;;  %v1780_v20 = vld [vmem:[%s2274_s2 + $0x20] sm:$0xff] (!%p367_p9)   ;;  %s1427_s19 = sshll.u32 (!%p367_p9), %s373_s13, 5  ;;  %v1784_v23 = vld [vmem:[%s2274_s2 + $0x28] sm:$0xff] (!%p367_p9)   ;;  %s2079_s15 = sshll.u32 (!%p367_p9), %s373_s13, 4  ;;  %v1888_v57 = vmov (!%p367_p9), 0.0  }
  0x2b   : > { %v1781_v21 = vld [vmem:[%s2275_s3 + $0x40] ss:$8 sps:$4 sm:$0xff] (!%p367_p9)   ;;  %v1782_v22 = vld [vmem:[%s2275_s3 + $0x54] ss:$8 sps:$4 sm:$0xff] (!%p367_p9)   ;;  %v1785_v24 = vld [vmem:[%s2275_s3 + $0x50] ss:$8 sps:$4 sm:$0xff] (!%p367_p9)  }
  0x2c   : > { %585 = vmatpush1.bf16.msra.mxu0 (!%p367_p9), %v1769_v12  ;;  %s2059_s17 = scalar_lea.vmem (!%p367_p9), [#allocation3], %s1427_s19  ;;  %v1786_v26 = vld [vmem:[%s2275_s3 + $0x64] ss:$8 sps:$4 sm:$0xff] (!%p367_p9)   ;;  %v1788_v27 = vld [vmem:[%s2274_s2 + $0x30] sm:$0xff] (!%p367_p9)   ;;  %v1789_v28 = vld [vmem:[%s2275_s3 + $0x60] ss:$8 sps:$4 sm:$0xff] (!%p367_p9)  }
  0x2d   : > { %1606 = vmatpush3.bf16.msra.mxu1 (!%p367_p9), %v1768_v11  ;;  %586 = vmatprep.subr.bf16.mxu0 (!%p367_p9), %v1770_v13  ;;  %v1794_v25 = vld [vmem:[%s2059_s17] sm:$0xff] (!%p367_p9)   ;;  %v1790_v29 = vld [vmem:[%s2275_s3 + $0x74] ss:$8 sps:$4 sm:$0xff] (!%p367_p9)   ;;  %v1793_v31 = vld [vmem:[%s2275_s3 + $0x70] ss:$8 sps:$4 sm:$0xff] (!%p367_p9)   ;;  %s375_s21 = scalar_lea.vmem (!%p367_p9), [#allocation2], %s2079_s15 }
  0x2e   : > { %1607 = vmatprep.subr.bf16.mxu1 %v1772_v14  ;;  %1619 = vmatprep.mubr.bf16.mxu1 %v1794_v25  ;;  %v1792_v30 = vld [vmem:[%s2274_s2 + $0x38] sm:$0xff]   ;;  %v1796_v32 = vld [vmem:[%s2059_s17 + $0x8] sm:$0xff]   ;;  %v759_v33 = vshll.u32 %v1794_v25, 16  ;;  %v1797_v34 = vld [vmem:[%s2274_s2 + $0x80] sm:$0xff]   ;;  %vm755_vm0 = vsmask.f32 7424 }
  0x2f   : > { %v1795_v35 = vld [vmem:[%s2059_s17 + $0x10] sm:$0xff]   ;;  %v757_v36 = vshrl.u32 %v1794_v25, 16  ;;  %v764_v37 = vshll.u32 %v1796_v32, 16  ;;  %v1798_v38 = vld [vmem:[%s2274_s2 + $0x88] sm:$0xff]   ;;  %v1799_v42 = vld [vmem:[%s2059_s17 + $0x18] sm:$0xff]   ;;  %v768_v50 = vshrl.u32 %v1796_v32, 16 }
  0x30   : > { %587 = vmatpush1.bf16.msra.mxu0 %v1773_v15  ;;  %v761_v39 = vrot.slane %v759_v33, 1  ;;  %v1800_v40 = vld [vmem:[%s2274_s2 + $0x90] sm:$0xff]   ;;  %v1801_v44 = vld [vmem:[%s2274_s2 + $0x98] sm:$0xff]   ;;  %v1802_v46 = vld [vmem:[%s2274_s2 + $0xa0] sm:$0xff]   ;;  %vm1889_vm1 = vmmov 0   ;;  %v2184_v10 = vshrl.u32 %v731_v9, 7 }
  0x31   : > { %1608 = vmatpush3.bf16.msra.mxu1 %v1772_v14  ;;  %588 = vmatprep.subr.bf16.mxu0 %v1774_v16  ;;  %v766_v41 = vrot.slane %v764_v37, 1  ;;  %v1803_v47 = vld [vmem:[%s2274_s2 + $0xa8] sm:$0xff]   ;;  %v1806_v48 = vld [vmem:[%s375_s21] sm:$0xff]   ;;  %v1805_v52 = vld [vmem:[%s2274_s2 + $0xb8] sm:$0xff]   ;;  %vm1172_vm2 = vcmask 1046528   ;;  %s1484_s19 = sshll.u32 %s1869_s23, 4 }
  0x32   : > { %1609 = vmatprep.subr.bf16.mxu1 %v1776_v17  ;;  %v762_v43 = vor.u32 %v761_v39, %v757_v36  ;;  %v1804_v49 = vld [vmem:[%s2274_s2 + $0xb0] sm:$0xff]   ;;  %v772_v51 = vshll.u32 %v1806_v48, 16  ;;  %v1807_v56 = vld [vmem:[%s2276_s4] sm:$0xff]   ;;  %v1808_v59 = vld [vmem:[%s2276_s4 + $0x8] sm:$0xff]   ;;  %v733_v11 = vsub.s32 2, %v2184_v10  ;;  %s1485_s8 = sadd.s32 4294967295, %s1484_s19 }
  0x33   : > { %v770_v53 = vor.u32 %v768_v50, %v766_v41  ;;  %v1809_v58 = vld [vmem:[%s2276_s4 + $0x40] sm:$0xff]   ;;  %v1811_v60 = vld [vmem:[%s2276_s4 + $0x48] sm:$0xff]   ;;  %v1810_v61 = vld [vmem:[%s2276_s4 + $0x10] sm:$0xff]   ;;  %v898_v39 = vstv %s1485_s8  ;;  %s1428_s10 = sshll.u32 %s1869_s23, 1  ;;  %p420_p10 = scmp.lt.s32.totalorder %s1873_s24, 1 }
  0x34   : > { %589 = vmatpush1.bf16.msra.mxu0 %v1777_v18  ;;  %v767_v45 = vsel %vm755_vm0, %v762_v43, %v766_v41  ;;  %v774_v54 = vrot.slane %v772_v51, 1  ;;  %v1813_v62 = vld [vmem:[%s2276_s4 + $0x50] sm:$0xff]   ;;  %v1812_v63 = vld [vmem:[%s2276_s4 + $0x18] sm:$0xff]   ;;  %v1814_v0 = vld [vmem:[%s2276_s4 + $0x20] sm:$0xff]   ;;  %v881_v41 = vsub.s32 0, %v2184_v10  ;;  %v899_v48 = vadd.s32 %v898_v39, %v2184_v10  ;;  %p422_p11 = scmp.lt.s32.totalorder %s1428_s10, 3 }
  0x35   : > { %1610 = vmatpush3.bf16.msra.mxu1 %v1776_v17  ;;  %590 = vmatprep.subr.bf16.mxu0 %v1778_v19  ;;  %v1815_v1 = vld [vmem:[%s2276_s4 + $0x58] sm:$0xff]   ;;  %v1816_v2 = vld [vmem:[%s2276_s4 + $0x28] sm:$0xff]   ;;  %v1817_v3 = vld [vmem:[%s2276_s4 + $0x60] sm:$0xff]   ;;  %s2293_s24 = smov (!%p420_p10, %s1873_s24), 1 }
  0x36   : > { %1611 = vmatprep.subr.bf16.mxu1 %v1780_v20  ;;  %v775_v55 = vsel %vm755_vm0, %v770_v53, %v774_v54  ;;  %v1818_v4 = vld [vmem:[%s2276_s4 + $0x30] sm:$0xff]   ;;  %v1819_v5 = vld [vmem:[%s2276_s4 + $0x68] sm:$0xff]   ;;  %v1820_v6 = vld [vmem:[%s2276_s4 + $0x38] sm:$0xff]   ;;  %vm903_vm10 = vcmp.ge.s32.totalorder %v899_v48, 0  ;;  %vm907_vm11 = vcmp.lt.s32.totalorder %v899_v48, 20  ;;  %s2295_s10 = smov (!%p422_p11, %s1428_s10), 3 }
  0x37   : > { %v1821_v7 = vld [vmem:[%s2276_s4 + $0x70] sm:$0xff]   ;;  %v2190_v12 = vld [vmem:[%s2277_s5] sm:$0x7]  ;;  %vm911_vm14 = vmand %vm903_vm10, %vm907_vm11  ;;  %s1429_s12 = sshll.u32 %s2293_s24, 2 }
  0x38   : > { %591 = vmatpush1.bf16.msra.mxu0 %v1781_v21  ;;  %v734_v13 = vrot.slane %v2190_v12, %v733_v11  ;;  %s425_s17 = sadd.s32 %s1429_s12, %s2295_s10 }
  0x39   : > { %1612 = vmatpush3.bf16.msra.mxu1 %v1780_v20  ;;  %592 = vmatprep.subr.bf16.mxu0 %v1782_v22  ;;  %s1430_s23 = sshll.u32 %s425_s17, 2 }
  0x3a   : > { %1613 = vmatprep.subr.bf16.mxu1 %v1784_v23  ;;  %s427_s18 = scalar_lea.vmem %s2278_s6, %s1430_s23 }
  0x3c   : > { %593 = vmatpush1.bf16.msra.mxu0 %v1785_v24 }
  0x3d   : > { %1614 = vmatpush3.bf16.msra.mxu1 %v1784_v23  ;;  %594 = vmatprep.subr.bf16.mxu0 %v1786_v26 }
  0x3e   : > { %1615 = vmatprep.subr.bf16.mxu1 %v1788_v27 }
  0x40   : > { %595 = vmatpush1.bf16.msra.mxu0 %v1789_v28 }
  0x41   : > { %1616 = vmatpush3.bf16.msra.mxu1 %v1788_v27  ;;  %596 = vmatprep.subr.bf16.mxu0 %v1790_v29 }
  0x42   : > { %1617 = vmatprep.subr.bf16.mxu1 %v1792_v30 }
  0x44   : > { %597 = vmatpush1.bf16.msra.mxu0 %v1793_v31 }
  0x45   : > { %1618 = vmatpush3.bf16.msra.mxu1 %v1792_v30  ;;  %1623 = vmatprep.subr.bf16.mxu0 %v1797_v34 }
  0x46   : > { %1643 = vmatprep.subr.bf16.mxu1 %v1888_v57 }
  0x47   : > { %615 = vmatmul.mubr.bf16.vlgmr.msra.gmra.mrb[0].mxu0 %v1795_v35 }
  0x48   : > { %1620 = vmatmul.mubr.bf16.vlgmr.msra.gmra.mrb[0].mxu1 %v1796_v32  ;;  %1624 = vmatpush3.bf16.msra.mxu0 %v1797_v34 }
  0x49   : > { %624 = vmatprep.mubr.bf16.mxu0 %v1887_v8  ;;  %1625 = vmatprep.subr.bf16.mxu0 %v1798_v38  ;;  %v1822_v8 = vld [vmem:[%s2276_s4 + $0x78] sm:$0xff]  }
  0x4a   : > { %1644 = vmatpush3.bf16.msra.mxu1 %v1809_v58  ;;  %1659 = vmatprep.mubr.msk.bf16.mxu1 %vm1889_vm1, %v1888_v57 }
  0x4b   : > { %1645 = vmatprep.subr.bf16.mxu1 %v1888_v57 }
  0x4c   : > { %1626 = vmatpush3.bf16.msra.mxu0 %v1798_v38  ;;  %v896_v38 = vadd.s32 16, %v2184_v10 }
  0x4d   : > { %1627 = vmatprep.subr.bf16.mxu0 %v1800_v40 }
  0x4e   : > { %1646 = vmatpush3.bf16.msra.mxu1 %v1811_v60  ;;  %v901_v43 = vadd.s32 %v898_v39, %v896_v38 }
  0x4f   : > { %625 = vmatmul.mubr.bf16.gmra.mrb[4].mxu0 %v1799_v42  ;;  %1647 = vmatprep.subr.bf16.mxu1 %v1888_v57  ;;  %v895_v42 = vadd.s32 8, %v2184_v10 }
  0x50   : > { %1628 = vmatpush3.bf16.msra.mxu0 %v1800_v40  ;;  %1639 = vmatprep.mubr.bf16.mxu0 %v767_v45  ;;  %v897_v40 = vadd.s32 24, %v2184_v10  ;;  %v882_v45 = vrot.slane %v2190_v12, %v881_v41  ;;  %vm905_vm3 = vcmp.ge.s32.totalorder %v901_v43, 0  ;;  %vm909_vm4 = vcmp.lt.s32.totalorder %v901_v43, 20 }
  0x51   : > { %1629 = vmatprep.subr.bf16.mxu0 %v1801_v44  ;;  %vm913_vm9 = vmand %vm905_vm3, %vm909_vm4 }
  0x52   : > { %1648 = vmatpush3.bf16.msra.mxu1 %v1813_v62 }
  0x53   : > { %1649 = vmatprep.subr.bf16.mxu1 %v1888_v57 }
  0x54   : > { %1630 = vmatpush3.bf16.msra.mxu0 %v1801_v44  ;;  %v902_v44 = vadd.s32 %v898_v39, %v897_v40  ;;  %v1270_v40 = vsub.s32 1, %v2184_v10 }
  0x55   : > { %1631 = vmatprep.subr.bf16.mxu0 %v1802_v46 }
  0x56   : > { %1650 = vmatpush3.bf16.msra.mxu1 %v1815_v1  ;;  %vm906_vm5 = vcmp.ge.s32.totalorder %v902_v44, 0  ;;  %vm910_vm6 = vcmp.lt.s32.totalorder %v902_v44, 20 }
  0x57   : > { %1651 = vmatprep.subr.bf16.mxu1 %v1888_v57  ;;  %vm914_vm12 = vmand %vm906_vm5, %vm910_vm6 }
  0x58   : > { %1632 = vmatpush3.bf16.msra.mxu0 %v1802_v46  ;;  %v900_v46 = vadd.s32 %v898_v39, %v895_v42 }
  0x59   : > { %1633 = vmatprep.subr.bf16.mxu0 %v1803_v47 }
  0x5a   : > { %1652 = vmatpush3.bf16.msra.mxu1 %v1817_v3  ;;  %vm904_vm7 = vcmp.ge.s32.totalorder %v900_v46, 0  ;;  %vm908_vm8 = vcmp.lt.s32.totalorder %v900_v46, 20 }
  0x5b   : > { %1653 = vmatprep.subr.bf16.mxu1 %v1888_v57  ;;  %vm912_vm13 = vmand %vm904_vm7, %vm908_vm8 }
  0x5c   : > { %1634 = vmatpush3.bf16.msra.mxu0 %v1803_v47  ;;  %vm1518_vm15 = vmpackc.low %vm912_vm13, %vm911_vm14 }
  0x5d   : > { %1635 = vmatprep.subr.bf16.mxu0 %v1804_v49 }
  0x5e   : > { %1654 = vmatpush3.bf16.msra.mxu1 %v1819_v5 }
  0x5f   : > { %1655 = vmatprep.subr.bf16.mxu1 %v1888_v57 }
  0x60   : > { %1636 = vmatpush3.bf16.msra.mxu0 %v1804_v49 }
  0x61   : > { %1637 = vmatprep.subr.bf16.mxu0 %v1805_v52 }
  0x62   : > { %1656 = vmatpush3.bf16.msra.mxu1 %v1821_v7 }
  0x63   : > { %1657 = vmatprep.subr.bf16.mxu1 %v1888_v57 }
  0x64   : > { %1638 = vmatpush3.bf16.msra.mxu0 %v1805_v52 }
  0x65   : > { %1663 = vmatprep.subr.bf16.mxu0 %v1888_v57 }
  0x66   : > { %1658 = vmatpush3.bf16.msra.mxu1 %v1822_v8 }
  0x67   : > { %1640 = vmatmul.mubr.bf16.vlgmr.msra.gmra.mrb[8].mxu0 %v775_v55  ;;  %1683 = vmatprep.subr.bf16.mxu1 %v1888_v57 }
  0x68   : > { %1664 = vmatpush3.bf16.msra.mxu0 %v1807_v56  ;;  %1679 = vmatprep.mubr.msk.bf16.mxu0 %vm1889_vm1, %v1888_v57 }
  0x69   : > { %1665 = vmatprep.subr.bf16.mxu0 %v1888_v57 }
  0x6c   : > { %1666 = vmatpush3.bf16.msra.mxu0 %v1808_v59 }
  0x6d   : > { %1667 = vmatprep.subr.bf16.mxu0 %v1888_v57 }
  0x70   : > { %1668 = vmatpush3.bf16.msra.mxu0 %v1810_v61 }
  0x71   : > { %1669 = vmatprep.subr.bf16.mxu0 %v1888_v57 }
  0x74   : > { %1670 = vmatpush3.bf16.msra.mxu0 %v1812_v63 }
  0x75   : > { %1671 = vmatprep.subr.bf16.mxu0 %v1888_v57 }
  0x78   : > { %1672 = vmatpush3.bf16.msra.mxu0 %v1814_v0 }
  0x79   : > { %1673 = vmatprep.subr.bf16.mxu0 %v1888_v57 }
  0x7c   : > { %1674 = vmatpush3.bf16.msra.mxu0 %v1816_v2 }
  0x7d   : > { %1675 = vmatprep.subr.bf16.mxu0 %v1888_v57 }
  0x80   : > { %1676 = vmatpush3.bf16.msra.mxu0 %v1818_v4 }
  0x81   : > { %1677 = vmatprep.subr.bf16.mxu0 %v1888_v57 }
  0x84   : > { %1678 = vmatpush3.bf16.msra.mxu0 %v1820_v6 }
 0x11a   : > { %v616_v14 = vpop.f32.mrb[0].mxu0 }
 0x11b   : > { %v1621_v15 = vpop.f32.mrb[0].mxu1  ;;  %v618_v16 = vpop.f32.mrb[1].mxu0 }
 0x11c   : > { %v716_v17 = vpop.f32.mrb[1].mxu1  ;;  %v735_v18 = vadd.f32 %v734_v13, %v618_v16  ;;  %v620_v20 = vpop.f32.mrb[2].mxu0 }
 0x11d   : > { %v717_v19 = vadd.f32 %v716_v17, %v616_v14  ;;  %v1622_v21 = vpop.f32.mrb[2].mxu1  ;;  %v622_v22 = vpop.f32.mrb[3].mxu0 }
 0x11e   : > { %v719_v23 = vpop.f32.mrb[3].mxu1  ;;  %v736_v24 = vadd.f32 %v734_v13, %v622_v22  ;;  %v1278_v26 = vrot.slane %v735_v18, 1  ;;  %v1825_v22 = vld [vmem:[%s2276_s4 + $0x90] sm:$0xff]  }
 0x11f   : > { %v720_v25 = vadd.f32 %v719_v23, %v620_v20  ;;  %v1826_v23 = vld [vmem:[%s2276_s4 + $0x98] sm:$0xff]  }
 0x120   : > { %v1279_v27 = vrot.slane %v736_v24, 1  ;;  %v1827_v24 = vld [vmem:[%s2276_s4 + $0xa0] sm:$0xff]  }
 0x122   : > { %v626_v28 = vpop.f32.mrb[4].mxu0  ;;  %v2194_v29 = vsel %vm1172_vm2, %v1278_v26, %v1279_v27  ;;  %v1829_v26 = vld [vmem:[%s2276_s4 + $0xb0] sm:$0xff]  }
 0x123   : > { %v725_v30 = vadd.f32 %v1621_v15, %v626_v28  ;;  %v628_v31 = vpop.f32.mrb[5].mxu0 }
 0x124   : > { %v737_v32 = vadd.f32 %v734_v13, %v628_v31  ;;  %v630_v33 = vpop.f32.mrb[6].mxu0 }
 0x125   : > { %v728_v34 = vadd.f32 %v1622_v21, %v630_v33  ;;  %v632_v35 = vpop.f32.mrb[7].mxu0  ;;  %v1824_v21 = vld [vmem:[%s2276_s4 + $0x88] sm:$0xff]  }
 0x126   : > { %v1281_v36 = vrot.slane %v737_v32, 1 }
 0x128   : > { %v2197_v37 = vsel %vm1172_vm2, %v1279_v27, %v1281_v36  ;;  %v1830_v27 = vld [vmem:[%s2276_s4 + $0xb8] sm:$0xff]  }
 0x13a   : > { %v1641_v47 = vpop.f32.mrb[8].mxu0 }
 0x13b   : > { %v877_v49 = vadd.f32 %v1641_v47, %v725_v30  ;;  %v860_v50 = vpop.f32.mrb[9].mxu0 }
 0x13c   : > { %v875_v51 = vadd.f32 %v860_v50, %v717_v19  ;;  %v1642_v52 = vpop.f32.mrb[10].mxu0  ;;  %v1823_v19 = vld [vmem:[%s2276_s4 + $0x80] sm:$0xff]  }
 0x13d   : > { %v885_v53 = vadd.f32 %v882_v45, %v877_v49  ;;  %v878_v54 = vadd.f32 %v1642_v52, %v728_v34  ;;  %v863_v55 = vpop.f32.mrb[11].mxu0 }
 0x13e   : > { %v883_v56 = vadd.f32 %v882_v45, %v875_v51  ;;  %v876_v58 = vadd.f32 %v863_v55, %v720_v25  ;;  %v1828_v25 = vld [vmem:[%s2276_s4 + $0xa8] sm:$0xff]  }
 0x13f   : > { %v889_v59 = vmax.f32 %v885_v53, 0.0  ;;  %v886_v60 = vadd.f32 %v882_v45, %v878_v54 }
 0x140   : > { %v887_v61 = vmax.f32 %v883_v56, 0.0  ;;  %v884_v62 = vadd.f32 %v882_v45, %v876_v58 }
 0x141   : > { %v890_v63 = vmax.f32 %v886_v60, 0.0  ;;  %v925_v1 = vsel %vm913_vm9, %v889_v59, 0.0 }
 0x142   : > { %v888_v0 = vmax.f32 %v884_v62, 0.0  ;;  %v923_v3 = vsel %vm911_vm14, %v887_v61, 0.0 }
 0x143   : > { %v926_v2 = vsel %vm914_vm12, %v890_v63, 0.0 }
 0x144   : > { %v928_v4 = vpack.c.bf16 %v926_v2, %v925_v1  ;;  %v924_v5 = vsel %vm912_vm13, %v888_v0, 0.0  ;;  %v1519_v6 = vpack.c.bf16 %v888_v0, %v887_v61 }
 0x145   : > { %v927_v7 = vpack.c.bf16 %v924_v5, %v923_v3 }
 0x146   : > { %1680 = vmatmul.mubr.msk.bf16.vlgmr.msra.gmra.mrb[12].mxu0 %vm1518_vm15, %v1519_v6  ;;  %v1174_v8 = vrot.slane %v928_v4, 1  ;;  %v970_v9 = vshll.u32 %v928_v4, 16 }
 0x147   : > { %v965_v11 = vshll.u32 %v927_v7, 16  ;;  %v1173_v13 = vrot.slane %v927_v7, 1  ;;  %v963_v14 = vshrl.u32 %v927_v7, 16 }
 0x148   : > { %v972_v18 = vrot.slane %v970_v9, 1 }
 0x149   : > { %v967_v15 = vrot.slane %v965_v11, 1  ;;  %v1175_v16 = vsel %vm1172_vm2, %v1173_v13, %v1174_v8 }
 0x14b   : > { %v968_v17 = vor.u32 %v967_v15, %v963_v14 }
 0x14d   : > { %v973_v20 = vsel %vm755_vm0, %v968_v17, %v972_v18 }
 0x14e   : > { %1660 = vmatmul.mubr.bf16.vlgmr.msra.gmra.mrb[4].mxu1 %v973_v20 }
 0x14f   : > { %1684 = vmatpush3.bf16.msra.mxu1 %v1823_v19  ;;  %1699 = vmatprep.mubr.msk.bf16.mxu1 %vm1889_vm1, %v1888_v57 }
 0x150   : > { %1685 = vmatprep.subr.bf16.mxu1 %v1888_v57 }
 0x153   : > { %1686 = vmatpush3.bf16.msra.mxu1 %v1824_v21 }
 0x154   : > { %1687 = vmatprep.subr.bf16.mxu1 %v1888_v57 }
 0x157   : > { %1688 = vmatpush3.bf16.msra.mxu1 %v1825_v22 }
 0x158   : > { %1689 = vmatprep.subr.bf16.mxu1 %v1888_v57 }
 0x15b   : > { %1690 = vmatpush3.bf16.msra.mxu1 %v1826_v23 }
 0x15c   : > { %1691 = vmatprep.subr.bf16.mxu1 %v1888_v57 }
 0x15f   : > { %1692 = vmatpush3.bf16.msra.mxu1 %v1827_v24 }
 0x160   : > { %1693 = vmatprep.subr.bf16.mxu1 %v1888_v57 }
 0x163   : > { %1694 = vmatpush3.bf16.msra.mxu1 %v1828_v25 }
 0x164   : > { %1695 = vmatprep.subr.bf16.mxu1 %v1888_v57 }
 0x167   : > { %1696 = vmatpush3.bf16.msra.mxu1 %v1829_v26 }
 0x168   : > { %1697 = vmatprep.subr.bf16.mxu1 %v1888_v57  ;;  %v1271_v57 = vrot.slane %v2190_v12, %v1270_v40 }
 0x16b   : > { %1698 = vmatpush3.bf16.msra.mxu1 %v1830_v27 }
 0x16e   : > { %1700 = vmatmul.mubr.bf16.vlgmr.msra.gmra.mrb[8].mxu1 %v1175_v16 }
 0x219   : > { %v1146_v28 = vpop.f32.mrb[12].mxu0 }
 0x21a   : > { %v1681_v30 = vpop.f32.mrb[13].mxu0 }
 0x21b   : > { %v1149_v31 = vpop.f32.mrb[14].mxu0 }
 0x21c   : > { %v1682_v32 = vpop.f32.mrb[15].mxu0 }
 0x221   : > { %v1057_v33 = vpop.f32.mrb[4].mxu1 }
 0x222   : > { %v1147_v34 = vadd.f32 %v1146_v28, %v1057_v33  ;;  %v1661_v35 = vpop.f32.mrb[5].mxu1 }
 0x223   : > { %v1060_v36 = vpop.f32.mrb[6].mxu1 }
 0x224   : > { %v1150_v38 = vadd.f32 %v1149_v31, %v1060_v36  ;;  %v1662_v39 = vpop.f32.mrb[7].mxu1 }
 0x241   : > { %v1259_v41 = vpop.f32.mrb[8].mxu1 }
 0x242   : > { %v1266_v42 = vadd.f32 %v1259_v41, %v1147_v34  ;;  %v1701_v43 = vpop.f32.mrb[9].mxu1 }
 0x243   : > { %v1262_v44 = vpop.f32.mrb[10].mxu1 }
 0x244   : > { %v1272_v45 = vadd.f32 %v1271_v57, %v1266_v42  ;;  %v1267_v46 = vadd.f32 %v1262_v44, %v1150_v38  ;;  %v1702_v47 = vpop.f32.mrb[11].mxu1 }
 0x246   : > { %v1285_v48 = vadd.f32 %v2194_v29, %v1272_v45  ;;  %v1273_v49 = vadd.f32 %v1271_v57, %v1267_v46 }
 0x248   : > { %v1286_v10 = vadd.f32 %v2197_v37, %v1273_v49  ;;  %v1287_v50 = vmax.f32 %v1285_v48, 0.0 }
 0x24a   : > { %v1288_v51 = vmax.f32 %v1286_v10, 0.0 }
 0x24c   : > { %v1554_v12 = vpack.c.bf16 %v1288_v51, %v1287_v50 }
 0x24e   : > { %1555 = vst [vmem:[%s427_s18] sm:$0xff] %v1554_v12  }
 0x24f PF: > { %s16_s27 = sadd.s32 1, %s1885_s27   ;;  %s2280_s21 = smov %s1865_s22 }
 0x250   : > { %p13_p12 = scmp.ge.s32.totalorder %s16_s27, 6   ;;  %s2281_s22 = smov %s1980_s11 }
 0x251   : > { %s2282_s23 = smov %s1877_s25  ;;  %s2283_s24 = smov %s1881_s26 }
 0x252   : > { %s2284_s25 = smov %s2287_s28  ;;  %s2285_s26 = smov %s2291_s29 }
 0x253   :  { %15 = sbr.rel (!%p13_p12) target bundleno = 4 (0x4), region = 172 }

</bundles_post_ra>
